<compile_context>
chip_gen: v7x
topology: tpu7x:2x2x1
jax: 0.10.0
libtpu: 0.0.40
codegen_flags: <defaults>
</compile_context>

<pallas_src>
import functools

import jax
import jax.numpy as jnp
from jax.experimental import pallas as pl
from jax.experimental.pallas import tpu as pltpu


def _round_up(x, m):
    return (x + m - 1) // m * m


def _euler_step_kernel(x_ref, w_ref, b_ref, o_ref, acc_ref, *,
                       n_steps, h, compute_dtype):
    """One (row-tile, layer) grid step of the Forward-Euler integration.

    x_ref:   (tm, Hp)      input rows (read only at k == 0)
    w_ref:   (1, Hp, Hp)   weights of layer k (streamed per grid step)
    b_ref:   (1, 1, Hp)    bias of layer k
    o_ref:   (tm, Hp)      output rows (written only at k == n_steps-1)
    acc_ref: (tm, Hp) f32  Euler state carried across the layer axis
    """
    k = pl.program_id(1)

    @pl.when(k == 0)
    def _():
        acc_ref[...] = x_ref[...].astype(jnp.float32)

    x = acc_ref[...]                       # (tm, Hp), f32 carry
    w = w_ref[0]                           # (Hp, Hp), compute_dtype
    b = b_ref[0]                           # (1, Hp), f32
    # ψ_k(x) = tanh(x @ W_k + b_k): MXU matmul (f32 accumulate) + EUP tanh.
    f = jnp.tanh(
        jnp.dot(x.astype(compute_dtype), w, preferred_element_type=jnp.float32) + b
    )
    # Φ (Forward Euler): x + h * ψ_k(x), carried in f32.
    acc_ref[...] = x + h * f

    @pl.when(k == n_steps - 1)
    def _():
        o_ref[...] = acc_ref[...].astype(o_ref.dtype)


def solve_sequential_pallas(x2d, W, b, T, *, tm=256, compute_dtype=jnp.float32):
    """Sequential Forward-Euler solve on TPU.

    x2d: [M, H]; W: [N, H, H]; b: [N, 1, H].  Returns [M, H].
    """
    M, H = x2d.shape
    N = W.shape[0]
    h = float(T) / N

    # Lane-dense hidden dim, sublane-friendly (and MXU-amortizing) row tile.
    Hp = _round_up(H, 128)
    tm_eff = min(int(tm), _round_up(M, 8))
    Mp = _round_up(M, tm_eff)

    # Zero-pad (exactness preserved; see header comment).
    x_p = jnp.zeros((Mp, Hp), x2d.dtype).at[:M, :H].set(x2d)
    W_p = jnp.zeros((N, Hp, Hp), compute_dtype).at[:, :H, :H].set(
        W.astype(compute_dtype))
    b_p = jnp.zeros((N, 1, Hp), jnp.float32).at[:, :, :H].set(
        b.astype(jnp.float32))

    kernel = functools.partial(
        _euler_step_kernel, n_steps=N, h=h, compute_dtype=compute_dtype)

    w_itemsize = jnp.dtype(compute_dtype).itemsize
    x_itemsize = jnp.dtype(x2d.dtype).itemsize
    cost = pl.CostEstimate(
        flops=2 * Mp * Hp * Hp * N,
        transcendentals=Mp * Hp * N,
        bytes_accessed=(2 * Mp * Hp * x_itemsize          # x in + out
                        + N * Hp * Hp * w_itemsize        # weights
                        + N * Hp * 4),                    # biases
    )
    # VMEM budget: x/out double-buffered + 2 streamed W layers + bias + carry.
    vmem_bytes = (4 * tm_eff * Hp * x_itemsize
                  + 2 * Hp * Hp * w_itemsize
                  + 2 * 8 * Hp * 4
                  + tm_eff * Hp * 4)
    vmem_limit = int(min(max(2 * vmem_bytes, 32 * 1024 * 1024),
                         100 * 1024 * 1024))

    y_p = pl.pallas_call(
        kernel,
        out_shape=jax.ShapeDtypeStruct((Mp, Hp), x2d.dtype),
        grid_spec=pltpu.PrefetchScalarGridSpec(
            num_scalar_prefetch=0,
            grid=(Mp // tm_eff, N),              # rows (parallel), layers (last)
            in_specs=[
                pl.BlockSpec((tm_eff, Hp), lambda i, k: (i, 0)),   # row tile
                pl.BlockSpec((1, Hp, Hp), lambda i, k: (k, 0, 0)),  # W_k streamed
                pl.BlockSpec((1, 1, Hp), lambda i, k: (k, 0, 0)),   # b_k streamed
            ],
            out_specs=pl.BlockSpec((tm_eff, Hp), lambda i, k: (i, 0)),
            scratch_shapes=[pltpu.VMEM((tm_eff, Hp), jnp.float32)],  # Euler carry
        ),
        compiler_params=pltpu.CompilerParams(
            dimension_semantics=("parallel", "arbitrary"),
            vmem_limit_bytes=vmem_limit,
        ),
        cost_estimate=cost,
    )(x_p, W_p, b_p)

    return y_p[:M, :H]


class ContinuousBlock:
    """JAX/Pallas port of ContinuousBlock with ode_solver='Forward Euler'."""

    def __init__(self, W, b, N, T, coarsening_factor=2,
                 compute_dtype=jnp.float32, tm=256):
        assert W.shape[0] == N and b.shape[0] == N
        self.W = W
        self.b = b
        self.N = N
        self.T = T
        self.c = coarsening_factor
        self.compute_dtype = compute_dtype
        self.tm = tm

    def forward(self, x, level=0):
        N = self.N // self.c ** level
        assert N > 0, (
            f"Level {level} incompatible with {self.N} layers at the finest "
            f"level and a coarsening factor of {self.c}"
        )
        # ψ = self.ψ[::c**level]; Forward Euler uses the first N of them.
        stride = self.c ** level
        W = self.W[::stride][:N]
        b = self.b[::stride][:N]
        B, S, H = x.shape
        y2d = solve_sequential_pallas(
            x.reshape(B * S, H), W, b, self.T,
            tm=self.tm, compute_dtype=self.compute_dtype)
        return {"x": y2d.reshape(B, S, H)}


def _reference_forward(x, W, b, N, T, c, level, compute_dtype=jnp.float32):
    """Pure-JAX reference of the same forward pass (for verification)."""
    Nl = N // c ** level
    stride = c ** level
    Wl, bl = W[::stride][:Nl], b[::stride][:Nl]
    h = T / Nl
    B, S, H = x.shape
    y = x.reshape(B * S, H).astype(jnp.float32)
    for k in range(Nl):
        f = jnp.tanh(
            jnp.dot(y.astype(compute_dtype), Wl[k].astype(compute_dtype),
                    preferred_element_type=jnp.float32)
            + bl[k].astype(jnp.float32))
        y = y + h * f
    return y.reshape(B, S, H).astype(x.dtype)


if __name__ == "__main__":
    B, S, H = 2, 8, 32       # batch, sequence, hidden
    N, T, c = 4, 1.0, 2      # layers, integration time, coarsening factor

    key = jax.random.PRNGKey(0)
    kx, kw, kb = jax.random.split(key, 3)

    x = jax.random.normal(kx, (B, S, H), dtype=jnp.float32)
    # Deterministic synthetic ψ parameters (small scale for stability).
    W = 0.1 * jax.random.normal(kw, (N, H, H), dtype=jnp.float32)
    b = 0.1 * jax.random.normal(kb, (N, 1, H), dtype=jnp.float32)

    # --- f32 MXU path: strict check against the pure-JAX f32 reference. ---
    block_f32 = ContinuousBlock(W, b, N, T, coarsening_factor=c,
                                compute_dtype=jnp.float32)
    y = jax.block_until_ready(block_f32.forward(x, level=0)["x"])
    y_ref = _reference_forward(x, W, b, N, T, c, level=0)
    assert y.shape == x.shape and y.dtype == x.dtype
    assert jnp.allclose(y, y_ref, atol=1e-5, rtol=1e-5), "f32 mismatch"

    # Coarser level (uses ψ[::c], N//c steps), as in MGRIT.
    y_l1 = jax.block_until_ready(block_f32.forward(x, level=1)["x"])
    y_l1_ref = _reference_forward(x, W, b, N, T, c, level=1)
    assert jnp.allclose(y_l1, y_l1_ref, atol=1e-5, rtol=1e-5), "level-1 mismatch"

    # --- bf16 MXU path (v6e/v7x throughput): f32 carry/accumulate, loose tol. ---
    block_bf16 = ContinuousBlock(W, b, N, T, coarsening_factor=c,
                                 compute_dtype=jnp.bfloat16)
    y_bf16 = jax.block_until_ready(block_bf16.forward(x, level=0)["x"])
    assert jnp.allclose(y_bf16, y_ref, atol=2e-2, rtol=2e-2), "bf16 mismatch"

    print("KERNEL_OK")
</pallas_src>

<mosaic_0001>
module attributes {stable_mosaic.version = 11 : i64} {
  func.func @_euler_step_kernel(%arg0: i32, %arg1: i32, %arg2: memref<16x128xf32, #tpu.memory_space<vmem>>, %arg3: memref<1x128x128xf32, #tpu.memory_space<vmem>>, %arg4: memref<1x1x128xf32, #tpu.memory_space<vmem>>, %arg5: memref<16x128xf32, #tpu.memory_space<vmem>>, %arg6: memref<16x128xf32, #tpu.memory_space<vmem>>) attributes {dimension_semantics = [#tpu.dimension_semantics<parallel>, #tpu.dimension_semantics<arbitrary>], iteration_bounds = array<i64: 1, 4>, scalar_prefetch = 0 : i64, scratch_operands = 1 : i64, tpu.core_type = #tpu.core_type<tc>, window_params = [{transform_indices = @transform_0, window_bounds = array<i64: 16, 128>}, {transform_indices = @transform_1, window_bounds = array<i64: 1, 128, 128>}, {transform_indices = @transform_2, window_bounds = array<i64: 1, 1, 128>}, {transform_indices = @transform_3, window_bounds = array<i64: 16, 128>}]} {
    %c0_i32 = arith.constant 0 : i32
    %0 = arith.cmpi eq, %arg1, %c0_i32 : i32
    %1 = arith.extui %0 : i1 to i32
    %c0_i32_0 = arith.constant 0 : i32
    %2 = arith.cmpi ne, %1, %c0_i32_0 : i32
    scf.if %2 {
      %c0_12 = arith.constant 0 : index
      %c0_13 = arith.constant 0 : index
      %19 = vector.load %arg2[%c0_12, %c0_13] : memref<16x128xf32, #tpu.memory_space<vmem>>, vector<16x128xf32>
      %c0_14 = arith.constant 0 : index
      %c0_15 = arith.constant 0 : index
      %20 = vector.load %arg6[%c0_14, %c0_15] : memref<16x128xf32, #tpu.memory_space<vmem>>, vector<16x128xf32>
      tpu.vector_store %arg6[%c0_14, %c0_15], %19 {strides = array<i32>} : memref<16x128xf32, #tpu.memory_space<vmem>>, vector<16x128xf32>,
    } else {
    }
    %c0 = arith.constant 0 : index
    %c0_1 = arith.constant 0 : index
    %3 = vector.load %arg6[%c0, %c0_1] : memref<16x128xf32, #tpu.memory_space<vmem>>, vector<16x128xf32>
    %c0_2 = arith.constant 0 : index
    %c0_3 = arith.constant 0 : index
    %c0_4 = arith.constant 0 : index
    %4 = vector.load %arg3[%c0_2, %c0_3, %c0_4] : memref<1x128x128xf32, #tpu.memory_space<vmem>>, vector<1x128x128xf32>
    %5 = vector.shape_cast %4 : vector<1x128x128xf32> to vector<128x128xf32>
    %c0_5 = arith.constant 0 : index
    %c0_6 = arith.constant 0 : index
    %c0_7 = arith.constant 0 : index
    %6 = vector.load %arg4[%c0_5, %c0_6, %c0_7] : memref<1x1x128xf32, #tpu.memory_space<vmem>>, vector<1x1x128xf32>
    %7 = vector.shape_cast %6 : vector<1x1x128xf32> to vector<1x128xf32>
    %cst = arith.constant dense<0.000000e+00> : vector<16x128xf32>
    %8 = tpu.matmul %3, %5, %cst {dimension_numbers = #tpu.dot_dimension_numbers<[1], [0], [0], [1], [0, 0, 1, 1], [], []>} : vector<16x128xf32>, vector<128x128xf32>, vector<16x128xf32> -> vector<16x128xf32>
    %9 = vector.broadcast %7 : vector<1x128xf32> to vector<16x128xf32>
    %10 = arith.addf %8, %9 : vector<16x128xf32>
    %11 = math.tanh %10 : vector<16x128xf32>
    %cst_8 = arith.constant 2.500000e-01 : f32
    %12 = vector.broadcast %cst_8 : f32 to vector<16x128xf32>
    %13 = arith.mulf %12, %11 : vector<16x128xf32>
    %14 = arith.addf %3, %13 : vector<16x128xf32>
    %c0_9 = arith.constant 0 : index
    %c0_10 = arith.constant 0 : index
    %15 = vector.load %arg6[%c0_9, %c0_10] : memref<16x128xf32, #tpu.memory_space<vmem>>, vector<16x128xf32>
    tpu.vector_store %arg6[%c0_9, %c0_10], %14 {strides = array<i32>} : memref<16x128xf32, #tpu.memory_space<vmem>>, vector<16x128xf32>,
    %c3_i32 = arith.constant 3 : i32
    %16 = arith.cmpi eq, %arg1, %c3_i32 : i32
    %17 = arith.extui %16 : i1 to i32
    %c0_i32_11 = arith.constant 0 : i32
    %18 = arith.cmpi ne, %17, %c0_i32_11 : i32
    scf.if %18 {
      %c0_12 = arith.constant 0 : index
      %c0_13 = arith.constant 0 : index
      %19 = vector.load %arg6[%c0_12, %c0_13] : memref<16x128xf32, #tpu.memory_space<vmem>>, vector<16x128xf32>
      %c0_14 = arith.constant 0 : index
      %c0_15 = arith.constant 0 : index
      %20 = vector.load %arg5[%c0_14, %c0_15] : memref<16x128xf32, #tpu.memory_space<vmem>>, vector<16x128xf32>
      tpu.vector_store %arg5[%c0_14, %c0_15], %19 {strides = array<i32>} : memref<16x128xf32, #tpu.memory_space<vmem>>, vector<16x128xf32>,
    } else {
    }
    return
  }
  func.func @transform_0(%arg0: i32, %arg1: i32) -> (i32, i32) {
    %c0_i32 = arith.constant 0 : i32
    %c0_i32_0 = arith.constant 0 : i32
    return %arg0, %c0_i32 : i32, i32
  }
  func.func @transform_1(%arg0: i32, %arg1: i32) -> (i32, i32, i32) {
    %c0_i32 = arith.constant 0 : i32
    %c0_i32_0 = arith.constant 0 : i32
    %c0_i32_1 = arith.constant 0 : i32
    return %arg1, %c0_i32, %c0_i32_0 : i32, i32, i32
  }
  func.func @transform_2(%arg0: i32, %arg1: i32) -> (i32, i32, i32) {
    %c0_i32 = arith.constant 0 : i32
    %c0_i32_0 = arith.constant 0 : i32
    %c0_i32_1 = arith.constant 0 : i32
    return %arg1, %c0_i32, %c0_i32_0 : i32, i32, i32
  }
  func.func @transform_3(%arg0: i32, %arg1: i32) -> (i32, i32) {
    %c0_i32 = arith.constant 0 : i32
    %c0_i32_0 = arith.constant 0 : i32
    return %arg0, %c0_i32 : i32, i32
  }
}

</mosaic_0001>

<bundles_post_ra>
// kernel: tpu_custom_call.1
= control target key start
LH: loop header
LB: loop body
LE: loop exit
PB: predicated region body
PF: predicated region fallthrough
CT: control target
= control target key end

     0   :  { %8 = vsyncpa [#allocation4], 0  ;;  %s1030_s0 = inlined_call_operand.hbm [shape: f32[16,128], index: 0, kind: input, shape index: {}]   ;;  %s1031_s1 = inlined_call_operand.hbm [shape: f32[4,128,128], index: 1, kind: input, shape index: {}]   ;;  %s1032_s2 = inlined_call_operand.vmem [shape: f32[4,1,128], index: 2, kind: input, shape index: {}]   ;;  %s1033_s3 = inlined_call_operand.hbm [shape: f32[16,128], index: 3, kind: output, shape index: {}]  }
   0x1   :  { %9 = vsyncpa [#allocation7], 0 }
   0x2   :  { %11 = vsyncpa [#allocation7 + $0x1], 0 }
   0x3   :  { %12 = vsyncpa [#allocation5], 0  ;;  %s808_s12 = smov 0   ;;  %s810_s13 = smov 0  }
   0x4   :  { %s812_s14 = smov 0   ;;  %s814_s15 = smov 0  }
   0x5   :  { %s816_s16 = smov 0   ;;  %s818_s17 = smov 0  }
   0x6 LB: > { %s453_s18 = sadd.s32 4294967295, %s779_s17   ;;  %p76_p0 = scmp.ne.s32.totalorder %s763_s13, %s759_s12  ;;  %s779_s17 = sphi %s818_s17, %s18_s17   ;;  %s775_s16 = sphi %s816_s16, %s1051_s16   ;;  %s771_s15 = sphi %s814_s15, %s1050_s15   ;;  %s767_s14 = sphi %s812_s14, %s1049_s14   ;;  %s763_s13 = sphi %s810_s13, %s1048_s13   ;;  %s759_s12 = sphi %s808_s12, %s1047_s12  }
   0x7   : > { %p840_p1 = scmp.eq.s32.totalorder %s453_s18, 0  ;;  %p454_p2 = scmp.ge.s32.totalorder %s779_s17, 1 }
   0x8   : > { %p139_p3 = scmp.lt.s32.totalorder %s779_s17, 5  ;;  %s781_s22 = smov [#allocation3]  }
   0x9   : > { %s1038_s19 = scalar_select %p840_p1, 1, 0 }
   0xa   : > { %p848_p4 = por %p840_p1, %p76_p0  ;;  %p852_p5 = pnand %p454_p2, %p139_p3 }
   0xb   : > { %s154_s23 = sshll.u32 %s781_s22, 4  ;;  %s27_s25 = sadd.s32 1, %s775_s16  ;;  %s155_s23 = int_to_ptr.vmem [resolvable:$true] %s154_s23 }
   0xc   : > { %s1039_s20 = scalar_select %p848_p4, 1, 0 }
   0xd   : > { %s1040_s21 = scalar_select %p852_p5, 1, 0 }
   0xe   : > { %p566_p6 = pneg %p852_p5  ;;  %s637_s28 = scalar_lea.hbm %s1030_s0, 256 }
   0xf   : > { %p638_p8 = scmp.ne.s32.totalorder %s1030_s0, %s637_s28  ;;  %p644_p12 = scmp.lt.u32.totalorder %s637_s28, %s1030_s0 }
  0x10   : > { %p860_p7 = pnand %p566_p6, %p840_p1 }
  0x12   : > { %p639_p9 = pneg %p860_p7 }
  0x14   : > { %p640_p10 = pnand %p639_p9, %p638_p8 }
  0x16   : > { %p641_p11 = pneg %p640_p10 }
  0x18   : > { %p646_p13 = pnand %p644_p12, %p641_p11 }
  0x1a   : > { %649 = shalt.err (!%p646_p13)
}
  0x1b   : > { %s650_s6 = scalar_lea.vmem %s155_s23, 256  ;;  %p658_p6 = scmp.lt.s32.totalorder %s155_s23, %s155_s23 }
  0x1c   : > { %p651_p0 = scmp.ne.s32.totalorder %s155_s23, %s650_s6  ;;  %p659_p4 = scmp.lt.s32.totalorder %s650_s6, %s650_s6 }
  0x1e   : > { %p653_p2 = pnand %p651_p0, %p639_p9  ;;  %p660_p1 = por %p659_p4, %p658_p6 }
  0x20   : > { %p654_p3 = pneg %p653_p2 }
  0x22   : > { %p661_p5 = pnand %p660_p1, %p654_p3 }
  0x24   : > { %664 = shalt.err (!%p661_p5)
}
  0x25   : > { %s782_s7 = smov 128   ;;  %s783_s8 = smov 8  }
  0x26   : > { %569 = dma.hbm_to_vmem [thread:$0]  (!%p860_p7), %s1030_s0, 256, %s155_s23, [#allocation4], %s782_s7, %s782_s7, %s783_s8  }
  0x27   : > { %p28_p1 = scmp.ge.s32.totalorder %s27_s25, 4  ;;  %s63_s11 = sadd.s32 1, %s767_s14 }
  0x28   : > { %p70_p4 = scmp.ne.s32.totalorder %s767_s14, %s763_s13  ;;  %p71_p5 = scmp.eq.s32.totalorder %s779_s17, 0 }
  0x29   : > { %s1053_s25 = smov (%p28_p1, %s27_s25), 0  ;;  %p575_p9 = scmp.lt.s32.totalorder %s779_s17, 4 }
  0x2a   : > { %p72_p8 = por %p71_p5, %p70_p4  ;;  %s60_s12 = ssub.s32 %s775_s16, %s1053_s25 }
  0x2b   : > { %s168_s22 = sand.u32 1, %s767_s14   ;;  %p61_p10 = scmp.eq.s32.totalorder %s60_s12, 0 }
  0x2c   : > { %s457_s24 = sshll.u32 %s168_s22, 7  ;;  %s470_s26 = sshll.u32 %s775_s16, 11 }
  0x2d   : > { %s896_s27 = scalar_select %p61_p10, %s767_s14, %s63_s11  }
  0x2e   : > { %s901_s23 = scalar_lea.hbm %s1031_s1, %s470_s26  ;;  %s172_s30 = scalar_lea.vmem [#allocation6], %s457_s24 }
  0x2f   : > { %s179_s4 = sshll.u32 %s172_s30, 4  ;;  %p903_p7 = pnand %p575_p9, %p72_p8  ;;  %s907_s4 = int_to_ptr.vmem [resolvable:$true] %s179_s4 }
  0x30   : > { %s909_s6 = scalar_lea.sflag [#allocation7], %s168_s22  ;;  %s665_s9 = scalar_lea.hbm %s901_s23, 2048 }
  0x31   : > { %p666_p11 = scmp.ne.s32.totalorder %s901_s23, %s665_s9  ;;  %p667_p12 = pneg %p903_p7 }
  0x32   : > { %s670_s12 = scalar_lea.hbm %s1031_s1, 8192  ;;  %p671_p2 = scmp.lt.u32.totalorder %s901_s23, %s1031_s1 }
  0x33   : > { %p668_p13 = pnand %p667_p12, %p666_p11  ;;  %p672_p3 = scmp.lt.u32.totalorder %s670_s12, %s665_s9 }
  0x34   : > { %p674_p1 = scmp.lt.u32.totalorder %s665_s9, %s901_s23 }
  0x35   : > { %p669_p0 = pneg %p668_p13  ;;  %p673_p6 = por %p672_p3, %p671_p2 }
  0x37   : > { %p675_p4 = por %p674_p1, %p673_p6 }
  0x39   : > { %p676_p5 = pnand %p675_p4, %p669_p0 }
  0x3b   : > { %679 = shalt.err (!%p676_p5)
}
  0x3c   : > { %s680_s22 = scalar_lea.vmem %s907_s4, 2048  ;;  %s784_s28 = smov [#allocation6]  }
  0x3d   : > { %p681_p8 = scmp.ne.s32.totalorder %s907_s4, %s680_s22  ;;  %s685_s29 = sshll.u32 %s784_s28, 4  ;;  %s686_s29 = int_to_ptr.vmem [resolvable:$false] %s685_s29 }
  0x3e   : > { %s687_s30 = scalar_lea.vmem %s686_s29, 4096  ;;  %p688_p11 = scmp.lt.s32.totalorder %s907_s4, %s686_s29 }
  0x3f   : > { %p683_p9 = pnand %p681_p8, %p667_p12  ;;  %p689_p13 = scmp.lt.s32.totalorder %s687_s30, %s680_s22 }
  0x41   : > { %p684_p10 = pneg %p683_p9  ;;  %p690_p2 = por %p689_p13, %p688_p11 }
  0x43   : > { %p691_p3 = pnand %p690_p2, %p684_p10 }
  0x45   : > { %694 = shalt.err (!%p691_p3)
}
  0x46   : > { %573 = dma.hbm_to_vmem [thread:$0]  (!%p903_p7), %s901_s23, 2048, %s907_s4, %s909_s6, %s782_s7, %s782_s7, %s783_s8  }
  0x47   : > { %p1043_p12 = scmp.ne.s32.totalorder %s1040_s21, 0 }
  0x48   : > { %p1044_p0 = scmp.ne.s32.totalorder (!%p1043_p12), %s1038_s19, 0 }
  0x49   : > { %197 = sbr.rel (%p1043_p12) target bundleno = 395 (0x18b), region = 32 }
  0x50   : > { %746 = dma.done.wait (%p1044_p0), [#allocation4], 256  }
  0x51   : > { %748 = vsyncadd (%p1044_p0), [#allocation4], 4294967040  ;;  %s203_s9 = sand.u32 1, %s763_s13   ;;  %p1045_p6 = scmp.ne.s32.totalorder %s1039_s20, 0 }
  0x52   : > { %s462_s5 = sshll.u32 %s203_s9, 7  ;;  %s204_s10 = scalar_lea.sflag [#allocation7], %s203_s9 }
  0x53   : > { %s947_s11 = scalar_lea.vmem [#allocation6], %s462_s5 }
  0x54   : > { %750 = dma.done.wait (%p1045_p6), %s204_s10, 2048  }
  0x55   : > { %752 = vsyncadd (%p1045_p6), %s204_s10, 4294965248  ;;  %p229_p7 = scmp.lt.s32.totalorder %s771_s15, 3  ;;  %p463_p1 = scmp.ne.s32.totalorder %s771_s15, 0 }
  0x56   : > { %v237_v0 = vld [vmem:[#allocation3] sm:$0xff] (!%p463_p1)  ;;  %v238_v1 = vld [vmem:[#allocation3 + $0x8] sm:$0xff] (!%p463_p1) }
  0x57   : > { %s955_s21 = scalar_select %p229_p7, %s771_s15, 3 }
  0x58   : > { %236 = sbr.rel (%p463_p1) target bundleno = 95 (0x5f), region = 44  ;;  %239 = vst [vmem:[#allocation2] sm:$0xff] (!%p463_p1), %v237_v0  ;;  %240 = vst [vmem:[#allocation2 + $0x8] sm:$0xff] (!%p463_p1), %v238_v1 }
  0x59   : > { %s231_s8 = scalar_lea.vmem %s1032_s2, %s955_s21 }
  0x5f PF: > { %v243_v2 = vld [vmem:[%s947_s11] sm:$0xff]  ;;  %v244_v3 = vld [vmem:[%s947_s11 + $0x8] sm:$0xff]  ;;  %v245_v4 = vld [vmem:[%s947_s11 + $0x10] sm:$0xff]  ;;  %p465_p4 = scmp.ne.s32.totalorder %s771_s15, 3 }
  0x60   : > { %v524_v5 = vpack.c.bf16 %v244_v3, %v243_v2  ;;  %v246_v6 = vld [vmem:[%s947_s11 + $0x18] sm:$0xff]  ;;  %v247_v8 = vld [vmem:[%s947_s11 + $0x20] sm:$0xff]  ;;  %v248_v9 = vld [vmem:[%s947_s11 + $0x28] sm:$0xff] }
  0x61   : > { %v528_v7 = vpack.c.bf16 %v246_v6, %v245_v4  ;;  %v532_v10 = vpack.c.bf16 %v248_v9, %v247_v8  ;;  %v241_v11 = vld [vmem:[#allocation2] sm:$0xff]  ;;  %v249_v12 = vld [vmem:[%s947_s11 + $0x30] sm:$0xff]  ;;  %v250_v13 = vld [vmem:[%s947_s11 + $0x38] sm:$0xff] }
  0x62   : > { %525 = vmatprep.subr.bf16.mxu0 %v524_v5  ;;  %521 = vmatprep.mubr.f32.mxu0 %v241_v11  ;;  %v536_v14 = vpack.c.bf16 %v250_v13, %v249_v12  ;;  %v251_v15 = vld [vmem:[%s947_s11 + $0x40] sm:$0xff]  ;;  %v252_v16 = vld [vmem:[%s947_s11 + $0x48] sm:$0xff]  ;;  %v253_v18 = vld [vmem:[%s947_s11 + $0x50] sm:$0xff] }
  0x63   : > { %527 = vmatpush3.bf16.msra.mxu0 %v524_v5  ;;  %v540_v17 = vpack.c.bf16 %v252_v16, %v251_v15  ;;  %v254_v19 = vld [vmem:[%s947_s11 + $0x58] sm:$0xff]  ;;  %v255_v21 = vld [vmem:[%s947_s11 + $0x60] sm:$0xff]  ;;  %v256_v22 = vld [vmem:[%s947_s11 + $0x68] sm:$0xff] }
  0x64   : > { %529 = vmatprep.subr.bf16.mxu0 %v528_v7  ;;  %v544_v20 = vpack.c.bf16 %v254_v19, %v253_v18  ;;  %v548_v23 = vpack.c.bf16 %v256_v22, %v255_v21  ;;  %v257_v24 = vld [vmem:[%s947_s11 + $0x70] sm:$0xff]  ;;  %v258_v25 = vld [vmem:[%s947_s11 + $0x78] sm:$0xff]  ;;  %v242_v27 = vld [vmem:[#allocation2 + $0x8] sm:$0xff] }
  0x65   : > { %v552_v26 = vpack.c.bf16 %v258_v25, %v257_v24  ;;  %v464_v28 = vld [vmem:[%s231_s8] ss:$0 sm:$0xff] }
  0x67   : > { %531 = vmatpush3.bf16.msra.mxu0 %v528_v7 }
  0x68   : > { %533 = vmatprep.subr.bf16.mxu0 %v532_v10 }
  0x6b   : > { %535 = vmatpush3.bf16.msra.mxu0 %v532_v10 }
  0x6c   : > { %537 = vmatprep.subr.bf16.mxu0 %v536_v14 }
  0x6f   : > { %539 = vmatpush3.bf16.msra.mxu0 %v536_v14 }
  0x70   : > { %541 = vmatprep.subr.bf16.mxu0 %v540_v17 }
  0x73   : > { %543 = vmatpush3.bf16.msra.mxu0 %v540_v17 }
  0x74   : > { %545 = vmatprep.subr.bf16.mxu0 %v544_v20 }
  0x77   : > { %547 = vmatpush3.bf16.msra.mxu0 %v544_v20 }
  0x78   : > { %549 = vmatprep.subr.bf16.mxu0 %v548_v23 }
  0x7b   : > { %551 = vmatpush3.bf16.msra.mxu0 %v548_v23 }
  0x7c   : > { %553 = vmatprep.subr.bf16.mxu0 %v552_v26 }
  0x7f   : > { %555 = vmatpush3.bf16.msra.mxu0 %v552_v26 }
  0x82   : > { %522 = vmatmul.mubr.f32.vlgmr.msra.gmra.mrb[0].mxu0 %v242_v27 }
 0x155   : > { %v523_v29 = vpop.f32.mrb[0].mxu0 }
 0x156   : > { %v338_v30 = vadd.f32 %v523_v29, %v464_v28  ;;  %v332_v31 = vpop.f32.mrb[1].mxu0 }
 0x157   : > { %v333_v32 = vadd.f32 %v464_v28, %v332_v31 }
 0x158   : > { %633 = vtanh.f32 %v338_v30 }
 0x159   : > { %635 = vtanh.f32 %v333_v32 }
 0x162   : > { %v634_v33 = vpop.eup %633  ;;  %352 = sbr.rel (%p465_p4) target bundleno = 369 (0x171), region = 48 }
 0x163   : > { %v636_v34 = vpop.eup %635  ;;  %v344_v35 = vmul.f32 0.25, %v634_v33 }
 0x164   : > { %v343_v36 = vmul.f32 0.25, %v636_v34 }
 0x165   : > { %v346_v37 = vadd.f32 %v344_v35, %v242_v27 }
 0x166   : > { %v345_v38 = vadd.f32 %v343_v36, %v241_v11 }
 0x167   : > { %348 = vst [vmem:[#allocation2 + $0x8] sm:$0xff] %v346_v37 }
 0x168   : > { %347 = vst [vmem:[#allocation2] sm:$0xff] %v345_v38 }
 0x16e   : > { %v354_v40 = vld [vmem:[#allocation2 + $0x8] sm:$0xff] }
 0x16f   : > { %v353_v39 = vld [vmem:[#allocation2] sm:$0xff]  ;;  %356 = vst [vmem:[#allocation8 + $0x8] sm:$0xff] %v354_v40 }
 0x170   : > { %355 = vst [vmem:[#allocation8] sm:$0xff] %v353_v39 }
 0x171 PF: > { %p986_p5 = scmp.eq.s32.totalorder %s453_s18, 3  ;;  %s785_s6 = smov [#allocation8]  }
 0x172   : > { %s366_s12 = sshll.u32 %s785_s6, 4  ;;  %s367_s12 = int_to_ptr.vmem [resolvable:$true] %s366_s12 }
 0x173   : > { %s695_s24 = scalar_lea.vmem %s367_s12, 256  ;;  %p702_p11 = scmp.lt.s32.totalorder %s367_s12, %s367_s12 }
 0x174   : > { %p696_p8 = scmp.ne.s32.totalorder %s367_s12, %s695_s24  ;;  %p703_p13 = scmp.lt.s32.totalorder %s695_s24, %s695_s24 }
 0x176   : > { %p697_p9 = pnand %p696_p8, %p986_p5  ;;  %p704_p2 = por %p703_p13, %p702_p11 }
 0x178   : > { %p698_p10 = pneg %p697_p9 }
 0x17a   : > { %p705_p3 = pnand %p704_p2, %p698_p10 }
 0x17c   : > { %708 = shalt.err (!%p705_p3)
}
 0x17d   : > { %s709_s18 = scalar_lea.hbm %s1033_s3, 256 }
 0x17e   : > { %p710_p12 = scmp.ne.s32.totalorder %s1033_s3, %s709_s18  ;;  %p715_p7 = scmp.lt.u32.totalorder %s709_s18, %s1033_s3 }
 0x180   : > { %p711_p0 = pnand %p710_p12, %p986_p5 }
 0x182   : > { %p712_p6 = pneg %p711_p0 }
 0x184   : > { %p717_p1 = pnand %p715_p7, %p712_p6 }
 0x186   : > { %720 = shalt.err (!%p717_p1)
}
 0x187   : > { %s786_s9 = smov 128   ;;  %s787_s5 = smov 8  }
 0x188   : > { %563 = dma.vmem_to_hbm [thread:$0]  (%p986_p5), %s367_s12, 256, %s1033_s3, [#allocation5], %s786_s9, %s786_s9, %s787_s5  }
 0x189   : > { %754 = dma.done.wait (%p986_p5), [#allocation5], 256  }
 0x18a   : > { %756 = vsyncadd (%p986_p5), [#allocation5], 4294967040 }
 0x18b PF: > { %s18_s17 = sadd.s32 1, %s779_s17   ;;  %s1047_s12 = smov %s763_s13 }
 0x18c   : > { %p15_p4 = scmp.ge.s32.totalorder %s18_s17, 6   ;;  %s1048_s13 = smov %s767_s14 }
 0x18d   : > { %s1049_s14 = smov %s896_s27  ;;  %s1050_s15 = smov %s775_s16 }
 0x18e   : > { %s1051_s16 = smov %s1053_s25  ;;  %17 = sbr.rel (!%p15_p4) target bundleno = 6 (0x6), region = 87 }
 0x195   :  { %382 = vsyncpa [#allocation4], 1 }
 0x196   :  { %384 = vsyncpa [#allocation4 + $0x1], 1 }
 0x197   :  { %385 = vsyncpa [#allocation7], 1 }
 0x198   :  { %387 = vsyncpa [#allocation7 + $0x1], 1 }
 0x199   :  { %388 = vsyncpa [#allocation5], 1 }
 0x19a   :  { %390 = vsyncpa [#allocation5 + $0x1], 1 }

</bundles_post_ra>
